<compile_context>
chip_gen: v5e
topology: v5e:2x2
jax: 0.10.0
libtpu: 0.0.40
codegen_flags: <defaults>
</compile_context>

<pallas_src>
import functools

import jax
import jax.numpy as jnp
from jax.experimental import pallas as pl
from jax.experimental.pallas import tpu as pltpu


def _round_up(x, m):
    return ((x + m - 1) // m) * m


def _celebnet_kernel(x_ref, w1_ref, b1_ref, wh_ref, bh_ref, w6_ref, b6_ref,
                     o_ref, *, compute_dtype, n_inputs):
    """Fused 6-layer MLP on one batch tile.

    x_ref:  (tile_m, n_inputs)  f32   (streamed per grid step)
    w1_ref: (n_inputs, Hp)      f32   (context folded into b1; H padded to Hp)
    b1_ref: (1, Hp)             f32
    wh_ref: (4, Hp, Hp)         compute_dtype  (layers 2..5, pre-transposed)
    bh_ref: (4, 1, Hp)          f32
    w6_ref: (Hp, n_out)         compute_dtype
    b6_ref: (1, n_out)          f32
    o_ref:  (tile_m, n_out)     f32
    """
    x = x_ref[...]                       # keep inputs in f32 (precision; K tiny)
    b1 = b1_ref[...]

    if n_inputs <= 8:
        # Layer 1 on the VPU: K is tiny, avoid an underutilized MXU pass.
        w1 = w1_ref[...]
        h = b1
        for i in range(n_inputs):
            h = h + x[:, i:i + 1] * w1[i:i + 1, :]
    else:
        h = jnp.dot(x, w1_ref[...], preferred_element_type=jnp.float32) + b1
    h = jnp.maximum(h, 0.0)

    # Hidden layers 2..5: lane-dense (tile_m, Hp) activations, f32 accumulate.
    for i in range(4):
        h = jnp.dot(h.astype(compute_dtype), wh_ref[i],
                    preferred_element_type=jnp.float32) + bh_ref[i]
        h = jnp.maximum(h, 0.0)

    # Output layer: un-padded (tile_m, n_out) block -> minimal HBM writeback.
    o_ref[...] = (jnp.dot(h.astype(compute_dtype), w6_ref[...],
                          preferred_element_type=jnp.float32)
                  + b6_ref[...]).astype(o_ref.dtype)


def celebnet_forward(x, task_context, params, *, tile_m=4096,
                     compute_dtype=jnp.bfloat16):
    """x: (B, n_inputs) f32. task_context: (size_hidden,) f32.
    params: PyTorch-convention weights W{i}: (out, in), b{i}: (out,)."""
    B, n_inputs = x.shape
    H = params["W2"].shape[0]
    n_out = params["W6"].shape[0]
    Hp = _round_up(H, 128)               # lane-dense hidden width

    # --- trace-time glue (plain JAX, tiny tensors) -------------------------
    def pad2(w, r, c):
        return jnp.zeros((r, c), jnp.float32).at[:w.shape[0], :w.shape[1]].set(w)

    # Fold task_context into the first-layer bias:
    #   x_cat @ W1.T + b1 == x @ W1[:, :n_in].T + (b1 + ctx @ W1[:, n_in:].T)
    W1 = params["W1"]
    w1_x = pad2(W1[:, :n_inputs].T, n_inputs, Hp)                     # (n_in, Hp)
    b1_eff = params["b1"] + task_context @ W1[:, n_inputs:].T         # (H,)
    b1_p = jnp.zeros((1, Hp), jnp.float32).at[0, :H].set(b1_eff)

    # Padded lanes of wh/bh are zero -> padded h lanes stay exactly 0 through
    # ReLU; padded rows of w6 are zero -> they cannot leak into real outputs.
    wh = jnp.stack([pad2(params[f"W{i}"].T, Hp, Hp) for i in range(2, 6)])
    bh = jnp.stack([jnp.zeros((1, Hp), jnp.float32).at[0, :H]
                    .set(params[f"b{i}"]) for i in range(2, 6)])
    w6 = pad2(params["W6"].T, Hp, n_out)                              # (Hp, n_out)
    b6 = params["b6"][None, :]                                        # (1, n_out)

    # Batch tiling: cap tile_m so there are >= 4 grid steps when B allows
    # (megacore + pipelining), multiple of 16, zero-pad the remainder rows.
    tile_m = int(tile_m)
    tile_m = min(tile_m, _round_up(pl.cdiv(B, 4), 16))
    tile_m = max(16, tile_m)
    grid_m = pl.cdiv(B, tile_m)
    B_pad = grid_m * tile_m
    x_p = jnp.pad(x, ((0, B_pad - B), (0, 0))) if B_pad != B else x

    cd = compute_dtype
    cd_bytes = jnp.dtype(cd).itemsize
    operands = (
        x_p,                               # f32, no wrapper-side cast
        w1_x,                              # f32 (layer 1 stays full precision)
        b1_p,
        wh.astype(cd),
        bh,
        w6.astype(cd),
        b6,
    )

    in_specs = [
        pl.BlockSpec((tile_m, n_inputs), lambda i: (i, 0)),   # streamed x tile
        pl.BlockSpec((n_inputs, Hp), lambda i: (0, 0)),       # resident weights
        pl.BlockSpec((1, Hp), lambda i: (0, 0)),
        pl.BlockSpec((4, Hp, Hp), lambda i: (0, 0, 0)),
        pl.BlockSpec((4, 1, Hp), lambda i: (0, 0, 0)),
        pl.BlockSpec((Hp, n_out), lambda i: (0, 0)),
        pl.BlockSpec((1, n_out), lambda i: (0, 0)),
    ]

    # VMEM budget: x/out tiles double-buffered (lane-padded physically),
    # resident weights, plus a generous allowance for live h temporaries.
    w_bytes = ((n_inputs * Hp + Hp + 4 * Hp + n_out) * 4
               + (4 * Hp * Hp + Hp * n_out) * cd_bytes)
    est = (2 * tile_m * Hp * 4            # x tile (lane-padded), double-buffered
           + 2 * tile_m * Hp * 4          # out tile (lane-padded), double-buffered
           + 2 * w_bytes                  # resident weights/biases
           + 8 * tile_m * Hp * 4)         # live activation temporaries
    vmem_limit = int(min(max(est, 32 * 1024 * 1024), 48 * 1024 * 1024))

    out = pl.pallas_call(
        functools.partial(_celebnet_kernel, compute_dtype=cd, n_inputs=n_inputs),
        out_shape=jax.ShapeDtypeStruct((B_pad, n_out), jnp.float32),
        grid_spec=pltpu.PrefetchScalarGridSpec(
            num_scalar_prefetch=0,
            grid=(grid_m,),
            in_specs=in_specs,
            out_specs=pl.BlockSpec((tile_m, n_out), lambda i: (i, 0)),
        ),
        compiler_params=pltpu.CompilerParams(
            dimension_semantics=("parallel",),
            vmem_limit_bytes=vmem_limit),
    )(*operands)

    return out[:B] if B_pad != B else out


def init_params(key, n_inputs, size_hidden, n_outputs):
    """Deterministic init matching CelebNet.__init__ shapes (PyTorch Linear
    convention: W (out, in), b (out,))."""
    dims = [(n_inputs + size_hidden, size_hidden)] + \
           [(size_hidden, size_hidden)] * 4 + \
           [(size_hidden, n_outputs)]
    params = {}
    for i, (fan_in, fan_out) in enumerate(dims, start=1):
        key, kw, kb = jax.random.split(key, 3)
        bound = 1.0 / jnp.sqrt(fan_in)
        params[f"W{i}"] = jax.random.uniform(
            kw, (fan_out, fan_in), jnp.float32, -bound, bound)
        params[f"b{i}"] = jax.random.uniform(
            kb, (fan_out,), jnp.float32, -bound, bound)
    return params


def reference_forward(x, task_context, params):
    """Pure-JAX reference of CelebNet.forward (concat form) for correctness."""
    B = x.shape[0]
    if task_context.shape[0] != 0:
        ctx = jnp.broadcast_to(task_context[None, :], (B, task_context.shape[0]))
        h = jnp.concatenate([x, ctx], axis=1)
    else:
        h = x
    for i in range(1, 6):
        h = jnp.maximum(h @ params[f"W{i}"].T + params[f"b{i}"], 0.0)
    return h @ params["W6"].T + params["b6"]


if __name__ == "__main__":
    # Small shapes consistent with the module: 2-D pixel coords -> RGB,
    # task_context of size size_hidden.
    n_inputs, size_hidden, n_outputs = 2, 32, 3
    batch = 50  # not a multiple of the tile -> exercises row padding + grid of 4

    key = jax.random.PRNGKey(0)
    key, kx, kc = jax.random.split(key, 3)
    x = jax.random.normal(kx, (batch, n_inputs), jnp.float32)
    # PyTorch initializes task_context to zeros (learnable); use a nonzero one
    # here so the bias-folding path is exercised numerically.
    task_context = 0.1 * jax.random.normal(kc, (size_hidden,), jnp.float32)

    params = init_params(key, n_inputs, size_hidden, n_outputs)
    ref = reference_forward(x, task_context, params)

    # f32 path (tight tolerance); default tile_m is capped so grid_m == 4.
    out_f32 = jax.block_until_ready(
        celebnet_forward(x, task_context, params, compute_dtype=jnp.float32))
    assert out_f32.shape == (batch, n_outputs)
    assert jnp.allclose(out_f32, ref, atol=1e-5, rtol=1e-5)

    # Default bf16-MXU-input path (f32 accumulation, f32 layer 1).
    out_bf16 = jax.block_until_ready(
        celebnet_forward(x, task_context, params, compute_dtype=jnp.bfloat16))
    assert out_bf16.shape == (batch, n_outputs)
    assert jnp.allclose(out_bf16, ref, atol=5e-2, rtol=5e-2)

    # Larger-n_inputs config exercises the MXU (dot) branch of layer 1.
    n_in2 = 16
    key, kx2, kc2 = jax.random.split(key, 3)
    x2 = jax.random.normal(kx2, (batch, n_in2), jnp.float32)
    ctx2 = 0.1 * jax.random.normal(kc2, (size_hidden,), jnp.float32)
    params2 = init_params(key, n_in2, size_hidden, n_outputs)
    ref2 = reference_forward(x2, ctx2, params2)
    out2 = jax.block_until_ready(
        celebnet_forward(x2, ctx2, params2, compute_dtype=jnp.float32))
    assert jnp.allclose(out2, ref2, atol=1e-5, rtol=1e-5)

    print("KERNEL_OK")
</pallas_src>

<mosaic_0001>
module attributes {stable_mosaic.version = 11 : i64} {
  func.func @_celebnet_kernel(%arg0: i32, %arg1: memref<16x2xf32, #tpu.memory_space<vmem>>, %arg2: memref<2x128xf32, #tpu.memory_space<vmem>>, %arg3: memref<1x128xf32, #tpu.memory_space<vmem>>, %arg4: memref<4x128x128xf32, #tpu.memory_space<vmem>>, %arg5: memref<4x1x128xf32, #tpu.memory_space<vmem>>, %arg6: memref<128x3xf32, #tpu.memory_space<vmem>>, %arg7: memref<1x3xf32, #tpu.memory_space<vmem>>, %arg8: memref<16x3xf32, #tpu.memory_space<vmem>>) attributes {dimension_semantics = [#tpu.dimension_semantics<parallel>], iteration_bounds = array<i64: 4>, scalar_prefetch = 0 : i64, scratch_operands = 0 : i64, tpu.core_type = #tpu.core_type<tc>, window_params = [{transform_indices = @transform_0, window_bounds = array<i64: 16, 2>}, {pipeline_mode = #tpu.pipeline_mode<synchronous>, transform_indices = @transform_1, window_bounds = array<i64: 2, 128>}, {pipeline_mode = #tpu.pipeline_mode<synchronous>, transform_indices = @transform_2, window_bounds = array<i64: 1, 128>}, {pipeline_mode = #tpu.pipeline_mode<synchronous>, transform_indices = @transform_3, window_bounds = array<i64: 4, 128, 128>}, {pipeline_mode = #tpu.pipeline_mode<synchronous>, transform_indices = @transform_4, window_bounds = array<i64: 4, 1, 128>}, {pipeline_mode = #tpu.pipeline_mode<synchronous>, transform_indices = @transform_5, window_bounds = array<i64: 128, 3>}, {pipeline_mode = #tpu.pipeline_mode<synchronous>, transform_indices = @transform_6, window_bounds = array<i64: 1, 3>}, {transform_indices = @transform_7, window_bounds = array<i64: 16, 3>}]} {
    %c0 = arith.constant 0 : index
    %c0_0 = arith.constant 0 : index
    %0 = vector.load %arg1[%c0, %c0_0] : memref<16x2xf32, #tpu.memory_space<vmem>>, vector<16x2xf32>
    %c0_1 = arith.constant 0 : index
    %c0_2 = arith.constant 0 : index
    %1 = vector.load %arg3[%c0_1, %c0_2] : memref<1x128xf32, #tpu.memory_space<vmem>>, vector<1x128xf32>
    %c0_3 = arith.constant 0 : index
    %c0_4 = arith.constant 0 : index
    %2 = vector.load %arg2[%c0_3, %c0_4] : memref<2x128xf32, #tpu.memory_space<vmem>>, vector<2x128xf32>
    %3 = vector.extract_strided_slice %0 {offsets = [0, 0], sizes = [16, 1], strides = [1, 1]} : vector<16x2xf32> to vector<16x1xf32>
    %4 = vector.extract_strided_slice %2 {offsets = [0, 0], sizes = [1, 128], strides = [1, 1]} : vector<2x128xf32> to vector<1x128xf32>
    %5 = vector.broadcast %3 : vector<16x1xf32> to vector<16x128xf32>
    %6 = vector.broadcast %4 : vector<1x128xf32> to vector<16x128xf32>
    %7 = arith.mulf %5, %6 : vector<16x128xf32>
    %8 = vector.broadcast %1 : vector<1x128xf32> to vector<16x128xf32>
    %9 = arith.addf %8, %7 : vector<16x128xf32>
    %10 = vector.extract_strided_slice %0 {offsets = [0, 1], sizes = [16, 1], strides = [1, 1]} : vector<16x2xf32> to vector<16x1xf32>
    %11 = vector.extract_strided_slice %2 {offsets = [1, 0], sizes = [1, 128], strides = [1, 1]} : vector<2x128xf32> to vector<1x128xf32>
    %12 = vector.broadcast %10 : vector<16x1xf32> to vector<16x128xf32>
    %13 = vector.broadcast %11 : vector<1x128xf32> to vector<16x128xf32>
    %14 = arith.mulf %12, %13 : vector<16x128xf32>
    %15 = arith.addf %9, %14 : vector<16x128xf32>
    %cst = arith.constant 0.000000e+00 : f32
    %16 = vector.broadcast %cst : f32 to vector<16x128xf32>
    %17 = arith.maximumf %15, %16 : vector<16x128xf32>
    %c0_5 = arith.constant 0 : index
    %c0_6 = arith.constant 0 : index
    %c0_7 = arith.constant 0 : index
    %18 = vector.load %arg4[%c0_5, %c0_6, %c0_7] : memref<4x128x128xf32, #tpu.memory_space<vmem>>, vector<1x128x128xf32>
    %19 = vector.shape_cast %18 : vector<1x128x128xf32> to vector<128x128xf32>
    %cst_8 = arith.constant dense<0.000000e+00> : vector<16x128xf32>
    %20 = tpu.matmul %17, %19, %cst_8 {dimension_numbers = #tpu.dot_dimension_numbers<[1], [0], [0], [1], [0, 0, 1, 1], [], []>} : vector<16x128xf32>, vector<128x128xf32>, vector<16x128xf32> -> vector<16x128xf32>
    %c0_9 = arith.constant 0 : index
    %c0_10 = arith.constant 0 : index
    %c0_11 = arith.constant 0 : index
    %21 = vector.load %arg5[%c0_9, %c0_10, %c0_11] : memref<4x1x128xf32, #tpu.memory_space<vmem>>, vector<1x1x128xf32>
    %22 = vector.shape_cast %21 : vector<1x1x128xf32> to vector<1x128xf32>
    %23 = vector.broadcast %22 : vector<1x128xf32> to vector<16x128xf32>
    %24 = arith.addf %20, %23 : vector<16x128xf32>
    %cst_12 = arith.constant 0.000000e+00 : f32
    %25 = vector.broadcast %cst_12 : f32 to vector<16x128xf32>
    %26 = arith.maximumf %24, %25 : vector<16x128xf32>
    %c1 = arith.constant 1 : index
    %c0_13 = arith.constant 0 : index
    %c0_14 = arith.constant 0 : index
    %27 = vector.load %arg4[%c1, %c0_13, %c0_14] : memref<4x128x128xf32, #tpu.memory_space<vmem>>, vector<1x128x128xf32>
    %28 = vector.shape_cast %27 : vector<1x128x128xf32> to vector<128x128xf32>
    %cst_15 = arith.constant dense<0.000000e+00> : vector<16x128xf32>
    %29 = tpu.matmul %26, %28, %cst_15 {dimension_numbers = #tpu.dot_dimension_numbers<[1], [0], [0], [1], [0, 0, 1, 1], [], []>} : vector<16x128xf32>, vector<128x128xf32>, vector<16x128xf32> -> vector<16x128xf32>
    %c1_16 = arith.constant 1 : index
    %c0_17 = arith.constant 0 : index
    %c0_18 = arith.constant 0 : index
    %30 = vector.load %arg5[%c1_16, %c0_17, %c0_18] : memref<4x1x128xf32, #tpu.memory_space<vmem>>, vector<1x1x128xf32>
    %31 = vector.shape_cast %30 : vector<1x1x128xf32> to vector<1x128xf32>
    %32 = vector.broadcast %31 : vector<1x128xf32> to vector<16x128xf32>
    %33 = arith.addf %29, %32 : vector<16x128xf32>
    %cst_19 = arith.constant 0.000000e+00 : f32
    %34 = vector.broadcast %cst_19 : f32 to vector<16x128xf32>
    %35 = arith.maximumf %33, %34 : vector<16x128xf32>
    %c2 = arith.constant 2 : index
    %c0_20 = arith.constant 0 : index
    %c0_21 = arith.constant 0 : index
    %36 = vector.load %arg4[%c2, %c0_20, %c0_21] : memref<4x128x128xf32, #tpu.memory_space<vmem>>, vector<1x128x128xf32>
    %37 = vector.shape_cast %36 : vector<1x128x128xf32> to vector<128x128xf32>
    %cst_22 = arith.constant dense<0.000000e+00> : vector<16x128xf32>
    %38 = tpu.matmul %35, %37, %cst_22 {dimension_numbers = #tpu.dot_dimension_numbers<[1], [0], [0], [1], [0, 0, 1, 1], [], []>} : vector<16x128xf32>, vector<128x128xf32>, vector<16x128xf32> -> vector<16x128xf32>
    %c2_23 = arith.constant 2 : index
    %c0_24 = arith.constant 0 : index
    %c0_25 = arith.constant 0 : index
    %39 = vector.load %arg5[%c2_23, %c0_24, %c0_25] : memref<4x1x128xf32, #tpu.memory_space<vmem>>, vector<1x1x128xf32>
    %40 = vector.shape_cast %39 : vector<1x1x128xf32> to vector<1x128xf32>
    %41 = vector.broadcast %40 : vector<1x128xf32> to vector<16x128xf32>
    %42 = arith.addf %38, %41 : vector<16x128xf32>
    %cst_26 = arith.constant 0.000000e+00 : f32
    %43 = vector.broadcast %cst_26 : f32 to vector<16x128xf32>
    %44 = arith.maximumf %42, %43 : vector<16x128xf32>
    %c3 = arith.constant 3 : index
    %c0_27 = arith.constant 0 : index
    %c0_28 = arith.constant 0 : index
    %45 = vector.load %arg4[%c3, %c0_27, %c0_28] : memref<4x128x128xf32, #tpu.memory_space<vmem>>, vector<1x128x128xf32>
    %46 = vector.shape_cast %45 : vector<1x128x128xf32> to vector<128x128xf32>
    %cst_29 = arith.constant dense<0.000000e+00> : vector<16x128xf32>
    %47 = tpu.matmul %44, %46, %cst_29 {dimension_numbers = #tpu.dot_dimension_numbers<[1], [0], [0], [1], [0, 0, 1, 1], [], []>} : vector<16x128xf32>, vector<128x128xf32>, vector<16x128xf32> -> vector<16x128xf32>
    %c3_30 = arith.constant 3 : index
    %c0_31 = arith.constant 0 : index
    %c0_32 = arith.constant 0 : index
    %48 = vector.load %arg5[%c3_30, %c0_31, %c0_32] : memref<4x1x128xf32, #tpu.memory_space<vmem>>, vector<1x1x128xf32>
    %49 = vector.shape_cast %48 : vector<1x1x128xf32> to vector<1x128xf32>
    %50 = vector.broadcast %49 : vector<1x128xf32> to vector<16x128xf32>
    %51 = arith.addf %47, %50 : vector<16x128xf32>
    %cst_33 = arith.constant 0.000000e+00 : f32
    %52 = vector.broadcast %cst_33 : f32 to vector<16x128xf32>
    %53 = arith.maximumf %51, %52 : vector<16x128xf32>
    %c0_34 = arith.constant 0 : index
    %c0_35 = arith.constant 0 : index
    %54 = vector.load %arg6[%c0_34, %c0_35] : memref<128x3xf32, #tpu.memory_space<vmem>>, vector<128x3xf32>
    %cst_36 = arith.constant dense<0.000000e+00> : vector<16x3xf32>
    %55 = tpu.matmul %53, %54, %cst_36 {dimension_numbers = #tpu.dot_dimension_numbers<[1], [0], [0], [1], [0, 0, 1, 1], [], []>} : vector<16x128xf32>, vector<128x3xf32>, vector<16x3xf32> -> vector<16x3xf32>
    %c0_37 = arith.constant 0 : index
    %c0_38 = arith.constant 0 : index
    %56 = vector.load %arg7[%c0_37, %c0_38] : memref<1x3xf32, #tpu.memory_space<vmem>>, vector<1x3xf32>
    %57 = vector.broadcast %56 : vector<1x3xf32> to vector<16x3xf32>
    %58 = arith.addf %55, %57 : vector<16x3xf32>
    %c0_39 = arith.constant 0 : index
    %c0_40 = arith.constant 0 : index
    %59 = vector.load %arg8[%c0_39, %c0_40] : memref<16x3xf32, #tpu.memory_space<vmem>>, vector<16x3xf32>
    tpu.vector_store %arg8[%c0_39, %c0_40], %58 {strides = array<i32>} : memref<16x3xf32, #tpu.memory_space<vmem>>, vector<16x3xf32>,
    return
  }
  func.func @transform_0(%arg0: i32) -> (i32, i32) {
    %c0_i32 = arith.constant 0 : i32
    %c0_i32_0 = arith.constant 0 : i32
    return %arg0, %c0_i32 : i32, i32
  }
  func.func @transform_1(%arg0: i32) -> (i32, i32) {
    %c0_i32 = arith.constant 0 : i32
    %c0_i32_0 = arith.constant 0 : i32
    %c0_i32_1 = arith.constant 0 : i32
    return %c0_i32, %c0_i32_0 : i32, i32
  }
  func.func @transform_2(%arg0: i32) -> (i32, i32) {
    %c0_i32 = arith.constant 0 : i32
    %c0_i32_0 = arith.constant 0 : i32
    %c0_i32_1 = arith.constant 0 : i32
    return %c0_i32, %c0_i32_0 : i32, i32
  }
  func.func @transform_3(%arg0: i32) -> (i32, i32, i32) {
    %c0_i32 = arith.constant 0 : i32
    %c0_i32_0 = arith.constant 0 : i32
    %c0_i32_1 = arith.constant 0 : i32
    %c0_i32_2 = arith.constant 0 : i32
    return %c0_i32, %c0_i32_0, %c0_i32_1 : i32, i32, i32
  }
  func.func @transform_4(%arg0: i32) -> (i32, i32, i32) {
    %c0_i32 = arith.constant 0 : i32
    %c0_i32_0 = arith.constant 0 : i32
    %c0_i32_1 = arith.constant 0 : i32
    %c0_i32_2 = arith.constant 0 : i32
    return %c0_i32, %c0_i32_0, %c0_i32_1 : i32, i32, i32
  }
  func.func @transform_5(%arg0: i32) -> (i32, i32) {
    %c0_i32 = arith.constant 0 : i32
    %c0_i32_0 = arith.constant 0 : i32
    %c0_i32_1 = arith.constant 0 : i32
    return %c0_i32, %c0_i32_0 : i32, i32
  }
  func.func @transform_6(%arg0: i32) -> (i32, i32) {
    %c0_i32 = arith.constant 0 : i32
    %c0_i32_0 = arith.constant 0 : i32
    %c0_i32_1 = arith.constant 0 : i32
    return %c0_i32, %c0_i32_0 : i32, i32
  }
  func.func @transform_7(%arg0: i32) -> (i32, i32) {
    %c0_i32 = arith.constant 0 : i32
    %c0_i32_0 = arith.constant 0 : i32
    return %arg0, %c0_i32 : i32, i32
  }
}

</mosaic_0001>

<bundles_post_ra>
// kernel: tpu_custom_call.1
= control target key start
LH: loop header
LB: loop body
LE: loop exit
PB: predicated region body
PF: predicated region fallthrough
CT: control target
= control target key end

     0   :  { %12 = vsyncpa [#allocation3], 0  ;;  %s788_s24 = smov 0   ;;  %s884_s0 = inlined_call_operand.vmem [shape: f32[64,2], index: 0, kind: input, shape index: {}]   ;;  %s885_s1 = inlined_call_operand.vmem [shape: f32[2,128], index: 1, kind: input, shape index: {}]   ;;  %s886_s2 = inlined_call_operand.vmem [shape: f32[1,128], index: 2, kind: input, shape index: {}]   ;;  %s887_s3 = inlined_call_operand.hbm [shape: f32[4,128,128], index: 3, kind: input, shape index: {}]   ;;  %s888_s4 = inlined_call_operand.vmem [shape: f32[4,1,128], index: 4, kind: input, shape index: {}]   ;;  %s889_s5 = inlined_call_operand.vmem [shape: f32[128,3], index: 5, kind: input, shape index: {}]   ;;  %s890_s6 = inlined_call_operand.vmem [shape: f32[1,3], index: 6, kind: input, shape index: {}]   ;;  %s891_s7 = inlined_call_operand.vmem [shape: f32[64,3], index: 7, kind: output, shape index: {}]  }
   0x1 LB: > { %s218_s27 = sshll.u32 %s887_s3, 4  ;;  %s636_s28 = sadd.s32 4294967295, %s741_s24   ;;  %s741_s24 = sphi %s788_s24, %s18_s24   ;;  %s219_s27 = int_to_ptr.hbm [resolvable:$true] %s218_s27 }
   0x2   : > { %p638_p0 = scmp.ge.s32.totalorder %s741_s24, 1  ;;  %p201_p1 = scmp.lt.s32.totalorder %s741_s24, 5 }
   0x3   : > { %p676_p2 = scmp.eq.s32.totalorder %s636_s28, 0  ;;  %s743_s29 = smov [#allocation2]  }
   0x4   : > { %p202_p3 = pnand %p638_p0, %p201_p1  ;;  %s220_s30 = sshll.u32 %s743_s29, 4  ;;  %s221_s30 = int_to_ptr.vmem [resolvable:$true] %s220_s30 }
   0x5   : > { %s744_s8 = smov 128   ;;  %s745_s9 = smov 8  }
   0x6   : > { %p672_p4 = pneg %p202_p3  ;;  %254 = sbr.rel (%p202_p3) target bundleno = 818 (0x332), region = 48 }
   0x8   : > { %p673_p5 = pnand %p676_p2, %p672_p4 }
   0xa   : > { %675 = dma.hbm_to_vmem [thread:$0]  (!%p673_p5), %s219_s27, 8192, %s221_s30, [#allocation3], %s744_s8, %s744_s8, %s745_s9  }
   0xb   : > { %736 = dma.done.wait (%p676_p2), [#allocation3], 8192  }
   0xc   : > { %738 = vsyncadd (%p676_p2), [#allocation3], 4294959104  ;;  %s643_s10 = sshll.u32 %s636_s28, 1  ;;  %v746_v0 = vmov 0   ;;  %v351_v3 = vld [vmem:[#allocation2 + $0x78] sm:$0xff]  ;;  %v350_v4 = vld [vmem:[#allocation2 + $0x70] sm:$0xff] }
   0xd   : > { %691 = vset.pattern.permute.xlu0 %v746_v0  ;;  %693 = vset.pattern.permute.xlu1 %v746_v0  ;;  %p288_p6 = scmp.lt.s32.totalorder %s643_s10, 7  ;;  %v349_v5 = vld [vmem:[#allocation2 + $0x68] sm:$0xff]  ;;  %v348_v6 = vld [vmem:[#allocation2 + $0x60] sm:$0xff]  ;;  %v347_v7 = vld [vmem:[#allocation2 + $0x58] sm:$0xff]  ;;  %v747_v8 = vmov 1   ;;  %vm565_vm0 = vcmask 23552  }
   0xe   : > { %356 = vmatpush.msra.mxu0 %v351_v3  ;;  %v346_v9 = vld [vmem:[#allocation2 + $0x50] sm:$0xff]  ;;  %v345_v10 = vld [vmem:[#allocation2 + $0x48] sm:$0xff]  ;;  %v344_v11 = vld [vmem:[#allocation2 + $0x40] sm:$0xff] }
   0xf   : > { %s893_s10 = smov (!%p288_p6, %s643_s10), 7  ;;  %v343_v12 = vld [vmem:[#allocation2 + $0x38] sm:$0xff]  ;;  %v342_v13 = vld [vmem:[#allocation2 + $0x30] sm:$0xff]  ;;  %v341_v14 = vld [vmem:[#allocation2 + $0x28] sm:$0xff] }
  0x10   : > { %s644_s11 = sshll.u32 %s893_s10, 3  ;;  %357 = vmatpush.msra.mxu0 %v350_v4  ;;  %v340_v15 = vld [vmem:[#allocation2 + $0x20] sm:$0xff]  ;;  %v339_v16 = vld [vmem:[#allocation2 + $0x18] sm:$0xff]  ;;  %v338_v17 = vld [vmem:[#allocation2 + $0x10] sm:$0xff] }
  0x11   : > { %s291_s14 = scalar_lea.vmem %s884_s0, %s644_s11  ;;  %v337_v18 = vld [vmem:[#allocation2 + $0x8] sm:$0xff]  ;;  %v336_v19 = vld [vmem:[#allocation2] sm:$0xff]  ;;  %v397_v20 = vld [vmem:[#allocation2 + $0xf8] sm:$0xff]  ;;  %s297_s23 = scalar_lea.vmem %s891_s7, %s644_s11 }
  0x12   : > { %v299_v1 = vld [vmem:[%s291_s14] sm:$0xff]  ;;  %v300_v2 = vld [vmem:[%s291_s14 + $0x8] sm:$0xff]  ;;  %358 = vmatpush.msra.mxu0 %v349_v5  ;;  %v396_v21 = vld [vmem:[#allocation2 + $0xf0] sm:$0xff]  ;;  %403 = vmatpush.msra.mxu1 %v397_v20 }
  0x13   : > { %305 = vperm.xlu0 %691, %v299_v1   ;;  %310 = vperm.xlu1 %693, %v300_v2   ;;  %v395_v22 = vld [vmem:[#allocation2 + $0xe8] sm:$0xff]  ;;  %v394_v23 = vld [vmem:[#allocation2 + $0xe0] sm:$0xff]  ;;  %v393_v24 = vld [vmem:[#allocation2 + $0xd8] sm:$0xff] }
  0x14   : > { %359 = vmatpush.msra.mxu0 %v348_v6  ;;  %404 = vmatpush.msra.mxu1 %v396_v21  ;;  %v302_v25 = vld [vmem:[%s885_s1] sm:$0x3]  ;;  %v392_v27 = vld [vmem:[#allocation2 + $0xd0] sm:$0xff]  ;;  %v391_v30 = vld [vmem:[#allocation2 + $0xc8] sm:$0xff] }
  0x15   : > { %v313_v29 = vperm.slane %v302_v25, 0  ;;  %v390_v31 = vld [vmem:[#allocation2 + $0xc0] sm:$0xff]  ;;  %v329_v34 = vperm.slane %v302_v25, 1  ;;  %v389_v35 = vld [vmem:[#allocation2 + $0xb8] sm:$0xff]  ;;  %v388_v36 = vld [vmem:[#allocation2 + $0xb0] sm:$0xff] }
  0x16   : > { %360 = vmatpush.msra.mxu0 %v347_v7  ;;  %405 = vmatpush.msra.mxu1 %v395_v22  ;;  %v695_v32 = vld [vmem:[%s886_s2] ss:$0 sm:$0xff]  ;;  %v387_v41 = vld [vmem:[#allocation2 + $0xa8] sm:$0xff]  ;;  %v385_v48 = vld [vmem:[#allocation2 + $0x98] sm:$0xff] }
  0x17   : > { %v386_v44 = vld [vmem:[#allocation2 + $0xa0] sm:$0xff]  ;;  %v384_v51 = vld [vmem:[#allocation2 + $0x90] sm:$0xff]  ;;  %v383_v52 = vld [vmem:[#allocation2 + $0x88] sm:$0xff] }
  0x18   : > { %361 = vmatpush.msra.mxu0 %v346_v9  ;;  %406 = vmatpush.msra.mxu1 %v394_v23  ;;  %v382_v53 = vld [vmem:[#allocation2 + $0x80] sm:$0xff]  ;;  %v444_v54 = vld [vmem:[#allocation2 + $0x178] sm:$0xff]  ;;  %v443_v55 = vld [vmem:[#allocation2 + $0x170] sm:$0xff] }
  0x19   : > { %450 = vmatpush.msra.mxu2 %v444_v54  ;;  %v442_v56 = vld [vmem:[#allocation2 + $0x168] sm:$0xff]  ;;  %v441_v57 = vld [vmem:[#allocation2 + $0x160] sm:$0xff]  ;;  %v440_v58 = vld [vmem:[#allocation2 + $0x158] sm:$0xff] }
  0x1a   : > { %362 = vmatpush.msra.mxu0 %v345_v10  ;;  %407 = vmatpush.msra.mxu1 %v393_v24  ;;  %v439_v59 = vld [vmem:[#allocation2 + $0x150] sm:$0xff]  ;;  %v438_v60 = vld [vmem:[#allocation2 + $0x148] sm:$0xff]  ;;  %v437_v61 = vld [vmem:[#allocation2 + $0x140] sm:$0xff] }
  0x1b   : > { %692 = vset.pattern.permute.xlu0 %v747_v8  ;;  %694 = vset.pattern.permute.xlu1 %v747_v8  ;;  %v436_v62 = vld [vmem:[#allocation2 + $0x138] sm:$0xff]  ;;  %v696_v63 = vld [vmem:[%s888_s4] ss:$0 sm:$0xff]  ;;  %v435_v0 = vld [vmem:[#allocation2 + $0x130] sm:$0xff] }
  0x1c   : > { %322 = vperm.xlu0 %692, %v299_v1   ;;  %326 = vperm.xlu1 %694, %v300_v2   ;;  %v434_v1 = vld [vmem:[#allocation2 + $0x128] sm:$0xff]  ;;  %v433_v4 = vld [vmem:[#allocation2 + $0x120] sm:$0xff]  ;;  %v432_v6 = vld [vmem:[#allocation2 + $0x118] sm:$0xff] }
  0x1d   : > { %363 = vmatpush.msra.mxu0 %v344_v11  ;;  %408 = vmatpush.msra.mxu1 %v392_v27  ;;  %v431_v10 = vld [vmem:[#allocation2 + $0x110] sm:$0xff]  ;;  %v430_v11 = vld [vmem:[#allocation2 + $0x108] sm:$0xff]  ;;  %v484_v20 = vld [vmem:[#allocation2 + $0x1c0] sm:$0xff] }
  0x1e   : > { %451 = vmatpush.msra.mxu2 %v443_v55  ;;  %v483_v21 = vld [vmem:[#allocation2 + $0x1b8] sm:$0xff]  ;;  %v697_v22 = vld [vmem:[%s888_s4 + $0x1] ss:$0 sm:$0xff]  ;;  %v482_v23 = vld [vmem:[#allocation2 + $0x1b0] sm:$0xff] }
  0x1f   : > { %364 = vmatpush.msra.mxu0 %v343_v12  ;;  %409 = vmatpush.msra.mxu1 %v391_v30  ;;  %v429_v12 = vld [vmem:[#allocation2 + $0x100] sm:$0xff]  ;;  %v481_v24 = vld [vmem:[#allocation2 + $0x1a8] sm:$0xff] }
  0x20   : > { %452 = vmatpush.msra.mxu2 %v442_v56  ;;  %v480_v27 = vld [vmem:[#allocation2 + $0x1a0] sm:$0xff]  ;;  %v524_v56 = vld [vmem:[%s889_s5 + $0x10] sm:$0xff] }
  0x21   : > { %365 = vmatpush.msra.mxu0 %v342_v13  ;;  %410 = vmatpush.msra.mxu1 %v390_v31  ;;  %v491_v13 = vld [vmem:[#allocation2 + $0x1f8] sm:$0xff] }
  0x22   : > { %453 = vmatpush.msra.mxu2 %v441_v57  ;;  %497 = vmatpush.msra.mxu3 %v491_v13  ;;  %v523_v57 = vld [vmem:[%s889_s5 + $0x8] sm:$0xff] }
  0x23   : > { %366 = vmatpush.msra.mxu0 %v341_v14  ;;  %411 = vmatpush.msra.mxu1 %v389_v35  ;;  %v490_v14 = vld [vmem:[#allocation2 + $0x1f0] sm:$0xff]  ;;  %v476_v35 = vld [vmem:[#allocation2 + $0x180] sm:$0xff] }
  0x24   : > { %454 = vmatpush.msra.mxu2 %v440_v58  ;;  %498 = vmatpush.msra.mxu3 %v490_v14  ;;  %v522_v58 = vld [vmem:[%s889_s5] sm:$0xff] }
  0x25   : > { %367 = vmatpush.msra.mxu0 %v340_v15  ;;  %412 = vmatpush.msra.mxu1 %v388_v36  ;;  %v489_v15 = vld [vmem:[#allocation2 + $0x1e8] sm:$0xff]  ;;  %v537_v36 = vld [vmem:[%s889_s5 + $0x78] sm:$0xff] }
  0x26   : > { %455 = vmatpush.msra.mxu2 %v439_v59  ;;  %499 = vmatpush.msra.mxu3 %v489_v15  ;;  %v699_v59 = vld [vmem:[%s888_s4 + $0x3] ss:$0 sm:$0xff] }
  0x27   : > { %368 = vmatpush.msra.mxu0 %v339_v16  ;;  %413 = vmatpush.msra.mxu1 %v387_v41  ;;  %v488_v16 = vld [vmem:[#allocation2 + $0x1e0] sm:$0xff]  ;;  %v532_v41 = vld [vmem:[%s889_s5 + $0x50] sm:$0xff] }
  0x28   : > { %456 = vmatpush.msra.mxu2 %v438_v60  ;;  %500 = vmatpush.msra.mxu3 %v488_v16 }
  0x29   : > { %369 = vmatpush.msra.mxu0 %v338_v17  ;;  %414 = vmatpush.msra.mxu1 %v386_v44  ;;  %v487_v17 = vld [vmem:[#allocation2 + $0x1d8] sm:$0xff] }
  0x2a   : > { %457 = vmatpush.msra.mxu2 %v437_v61  ;;  %501 = vmatpush.msra.mxu3 %v487_v17  ;;  %v529_v44 = vld [vmem:[%s889_s5 + $0x38] sm:$0xff] }
  0x2b   : > { %370 = vmatpush.msra.mxu0 %v337_v18  ;;  %415 = vmatpush.msra.mxu1 %v385_v48  ;;  %v486_v18 = vld [vmem:[#allocation2 + $0x1d0] sm:$0xff] }
  0x2c   : > { %458 = vmatpush.msra.mxu2 %v436_v62  ;;  %502 = vmatpush.msra.mxu3 %v486_v18 }
  0x2d   : > { %371 = vmatpush.msra.mxu0 %v336_v19  ;;  %416 = vmatpush.msra.mxu1 %v384_v51  ;;  %v485_v19 = vld [vmem:[#allocation2 + $0x1c8] sm:$0xff] }
  0x2e   : > { %459 = vmatpush.msra.mxu2 %v435_v0  ;;  %503 = vmatpush.msra.mxu3 %v485_v19 }
  0x2f   : > { %417 = vmatpush.msra.mxu1 %v383_v52  ;;  %542 = vmatpush.msrb.mxu0 %v537_v36  ;;  %v525_v52 = vld [vmem:[%s889_s5 + $0x18] sm:$0xff] }
  0x30   : > { %460 = vmatpush.msra.mxu2 %v434_v1  ;;  %504 = vmatpush.msra.mxu3 %v484_v20 }
  0x31   : > { %418 = vmatpush.msra.mxu1 %v382_v53 }
  0x32   : > { %461 = vmatpush.msra.mxu2 %v433_v4  ;;  %505 = vmatpush.msra.mxu3 %v483_v21 }
  0x33   : > { %652 = vmatpush.msrb.mxu1 %v537_v36 }
  0x34   : > { %462 = vmatpush.msra.mxu2 %v432_v6  ;;  %506 = vmatpush.msra.mxu3 %v482_v23 }
  0x36   : > { %463 = vmatpush.msra.mxu2 %v431_v10  ;;  %507 = vmatpush.msra.mxu3 %v481_v24 }
  0x38   : > { %464 = vmatpush.msra.mxu2 %v430_v11  ;;  %508 = vmatpush.msra.mxu3 %v480_v27 }
  0x3a   : > { %465 = vmatpush.msra.mxu2 %v429_v12 }
  0x85   : > { %v306_v26 = vpop.permute.xlu0 %305  ;;  %v311_v28 = vpop.permute.xlu1 %310 }
  0x86   : > { %v314_v33 = vmul.f32 %v313_v29, %v306_v26  ;;  %v315_v39 = vmul.f32 %v313_v29, %v311_v28  ;;  %v479_v29 = vld [vmem:[#allocation2 + $0x198] sm:$0xff] }
  0x87   : > { %509 = vmatpush.msra.mxu3 %v479_v29 }
  0x88   : > { %v319_v38 = vadd.f32 %v695_v32, %v314_v33  ;;  %v320_v45 = vadd.f32 %v695_v32, %v315_v39  ;;  %v478_v33 = vld [vmem:[#allocation2 + $0x190] sm:$0xff]  ;;  %v534_v39 = vld [vmem:[%s889_s5 + $0x60] sm:$0xff] }
  0x89   : > { %510 = vmatpush.msra.mxu3 %v478_v33 }
  0x8e   : > { %v323_v37 = vpop.permute.xlu0 %322  ;;  %v327_v42 = vpop.permute.xlu1 %326 }
  0x8f   : > { %v330_v40 = vmul.f32 %v329_v34, %v323_v37  ;;  %v331_v46 = vmul.f32 %v329_v34, %v327_v42  ;;  %v477_v34 = vld [vmem:[#allocation2 + $0x188] sm:$0xff]  ;;  %v536_v37 = vld [vmem:[%s889_s5 + $0x70] sm:$0xff] }
  0x90   : > { %511 = vmatpush.msra.mxu3 %v477_v34  ;;  %543 = vmatpush.msrb.mxu0 %v536_v37  ;;  %v531_v42 = vld [vmem:[%s889_s5 + $0x48] sm:$0xff] }
  0x91   : > { %v332_v43 = vadd.f32 %v330_v40, %v319_v38  ;;  %v333_v49 = vadd.f32 %v331_v46, %v320_v45  ;;  %v535_v38 = vld [vmem:[%s889_s5 + $0x68] sm:$0xff]  ;;  %653 = vmatpush.msrb.mxu1 %v536_v37  ;;  %v533_v40 = vld [vmem:[%s889_s5 + $0x58] sm:$0xff]  ;;  %v698_v45 = vld [vmem:[%s888_s4 + $0x2] ss:$0 sm:$0xff] }
  0x92   : > { %512 = vmatpush.msra.mxu3 %v476_v35  ;;  %544 = vmatpush.msrb.mxu0 %v535_v38  ;;  %v528_v46 = vld [vmem:[%s889_s5 + $0x30] sm:$0xff] }
  0x93   : > { %v334_v47 = vmax.f32 %v332_v43, 0.0  ;;  %v335_v50 = vmax.f32 %v333_v49, 0.0  ;;  %654 = vmatpush.msrb.mxu1 %v535_v38  ;;  %v530_v43 = vld [vmem:[%s889_s5 + $0x40] sm:$0xff] }
  0x94   : > { %545 = vmatpush.msrb.mxu0 %v534_v39 }
  0x95   : > { %372 = vmatmul.f32.vlgmr.msra.gmra.mxu0 %v334_v47  ;;  %655 = vmatpush.msrb.mxu1 %v534_v39  ;;  %v527_v47 = vld [vmem:[%s889_s5 + $0x28] sm:$0xff] }
  0x96   : > { %546 = vmatpush.msrb.mxu0 %v533_v40 }
  0x97   : > { %656 = vmatpush.msrb.mxu1 %v533_v40 }
  0x98   : > { %547 = vmatpush.msrb.mxu0 %v532_v41 }
  0x99   : > { %657 = vmatpush.msrb.mxu1 %v532_v41 }
  0x9a   : > { %548 = vmatpush.msrb.mxu0 %v531_v42 }
  0x9b   : > { %658 = vmatpush.msrb.mxu1 %v531_v42 }
  0x9c   : > { %549 = vmatpush.msrb.mxu0 %v530_v43 }
  0x9d   : > { %375 = vmatmul.f32.gmra.mxu0 %v335_v50  ;;  %659 = vmatpush.msrb.mxu1 %v530_v43  ;;  %v526_v50 = vld [vmem:[%s889_s5 + $0x20] sm:$0xff] }
  0x9e   : > { %550 = vmatpush.msrb.mxu0 %v529_v44 }
  0x9f   : > { %660 = vmatpush.msrb.mxu1 %v529_v44 }
  0xa0   : > { %551 = vmatpush.msrb.mxu0 %v528_v46 }
  0xa1   : > { %661 = vmatpush.msrb.mxu1 %v528_v46 }
  0xa2   : > { %552 = vmatpush.msrb.mxu0 %v527_v47 }
  0xa3   : > { %662 = vmatpush.msrb.mxu1 %v527_v47 }
  0xa4   : > { %553 = vmatpush.msrb.mxu0 %v526_v50 }
  0xa5   : > { %663 = vmatpush.msrb.mxu1 %v526_v50 }
  0xa6   : > { %554 = vmatpush.msrb.mxu0 %v525_v52 }
  0xa7   : > { %664 = vmatpush.msrb.mxu1 %v525_v52 }
  0xa8   : > { %555 = vmatpush.msrb.mxu0 %v524_v56 }
  0xa9   : > { %665 = vmatpush.msrb.mxu1 %v524_v56 }
  0xaa   : > { %556 = vmatpush.msrb.mxu0 %v523_v57 }
  0xab   : > { %666 = vmatpush.msrb.mxu1 %v523_v57 }
  0xac   : > { %557 = vmatpush.msrb.mxu0 %v522_v58 }
  0xad   : > { %667 = vmatpush.msrb.mxu1 %v522_v58 }
 0x112   : > { %v373_v2 = vpop.f32.mrf.mxu0 }
 0x113   : > { %v374_v3 = vadd.f32 %v696_v63, %v373_v2  ;;  %v700_v2 = vld [vmem:[%s890_s6] ss:$0 sm:$0xff] }
 0x115   : > { %v379_v5 = vmax.f32 %v374_v3, 0.0 }
 0x117   : > { %419 = vmatmul.f32.vlgmr.msra.gmra.mxu1 %v379_v5 }
 0x11a   : > { %v376_v7 = vpop.f32.mrf.mxu0 }
 0x11b   : > { %v377_v8 = vadd.f32 %v696_v63, %v376_v7 }
 0x11d   : > { %v380_v9 = vmax.f32 %v377_v8, 0.0 }
 0x11f   : > { %422 = vmatmul.f32.gmra.mxu1 %v380_v9 }
 0x194   : > { %v420_v25 = vpop.f32.mrf.mxu1 }
 0x195   : > { %v421_v26 = vadd.f32 %v697_v22, %v420_v25 }
 0x197   : > { %v426_v28 = vmax.f32 %v421_v26, 0.0 }
 0x199   : > { %466 = vmatmul.f32.vlgmr.msra.gmra.mxu2 %v426_v28 }
 0x19c   : > { %v423_v30 = vpop.f32.mrf.mxu1 }
 0x19d   : > { %v424_v31 = vadd.f32 %v697_v22, %v423_v30 }
 0x19f   : > { %v427_v32 = vmax.f32 %v424_v31, 0.0 }
 0x1a1   : > { %469 = vmatmul.f32.gmra.mxu2 %v427_v32 }
 0x21c   : > { %v467_v48 = vpop.f32.mrf.mxu2 }
 0x21d   : > { %v468_v49 = vadd.f32 %v698_v45, %v467_v48 }
 0x21f   : > { %v473_v51 = vmax.f32 %v468_v49, 0.0 }
 0x221   : > { %513 = vmatmul.f32.vlgmr.msra.gmra.mxu3 %v473_v51 }
 0x224   : > { %v470_v53 = vpop.f32.mrf.mxu2 }
 0x225   : > { %v471_v54 = vadd.f32 %v698_v45, %v470_v53 }
 0x227   : > { %v474_v55 = vmax.f32 %v471_v54, 0.0 }
 0x229   : > { %516 = vmatmul.f32.gmra.mxu3 %v474_v55 }
 0x2a4   : > { %v514_v60 = vpop.f32.mrf.mxu3 }
 0x2a5   : > { %v515_v61 = vadd.f32 %v699_v59, %v514_v60 }
 0x2a7   : > { %v520_v62 = vmax.f32 %v515_v61, 0.0 }
 0x2a9   : > { %558 = vmatmul.f32.vlgmr.msrb.gmra.mxu0 %v520_v62 }
 0x2ac   : > { %v517_v63 = vpop.f32.mrf.mxu3 }
 0x2ad   : > { %v518_v0 = vadd.f32 %v699_v59, %v517_v63 }
 0x2af   : > { %v521_v1 = vmax.f32 %v518_v0, 0.0 }
 0x2b1   : > { %561 = vmatmul.f32.vlgmr.msrb.gmra.mxu1 %v521_v1 }
 0x326   : > { %v559_v3 = vpop.f32.mrf.mxu0 }
 0x327   : > { %v560_v4 = vadd.f32 %v700_v2, %v559_v3 }
 0x329   : > { %566 = vst.msk [vmem:[%s297_s23] sm:$0xff] %vm565_vm0, %v560_v4 }
 0x32e   : > { %v562_v5 = vpop.f32.mrf.mxu1 }
 0x32f   : > { %v563_v6 = vadd.f32 %v700_v2, %v562_v5 }
 0x331   : > { %567 = vst.msk [vmem:[%s297_s23 + $0x8] sm:$0xff] %vm565_vm0, %v563_v6 }
 0x332 PF: > { %s18_s24 = sadd.s32 1, %s741_s24  }
 0x333   : > { %p15_p7 = scmp.ge.s32.totalorder %s18_s24, 6  }
 0x335   :  { %17 = sbr.rel (!%p15_p7) target bundleno = 1 (0x1), region = 89 }
 0x33a   :  { %590 = vsyncpa [#allocation3], 1 }
 0x33b   :  { %592 = vsyncpa [#allocation3 + $0x1], 1 }

</bundles_post_ra>
